<compile_context>
chip_gen: v6e
topology: v6e:2x2x1
jax: 0.10.0
libtpu: 0.0.40
codegen_flags: <defaults>
</compile_context>

<pallas_src>
import math

import jax
import jax.numpy as jnp
from jax.experimental import pallas as pl
from jax.experimental.pallas import tpu as pltpu


# ~4 MiB per block.  BlockSpec double-buffers both the input and output tile,
# so peak pipeline VMEM is ~4x this (~16 MiB); we raise the scoped VMEM limit
# explicitly so this is safe on every generation (v5e scoped default is 16 MiB).
_TARGET_BLOCK_BYTES = 4 << 20
_VMEM_LIMIT_BYTES = 48 << 20


def _copy_kernel(x_ref, o_ref):
    # Pure data movement: one (tile_r, lanes) lane-dense tile per grid step.
    o_ref[...] = x_ref[...]


def _choose_layout(total_elems, itemsize):
    """Pick a copy-friendly (rows, lanes, tile_r) flattening.

    lanes : largest of {1024, 512, 256, 128} dividing total_elems
            (lane-dense, unmasked vst along the lane axis).
    tile_r: multiple of the dtype's sublane pack (8 f32 / 16 bf16 / 32 int8)
            sized so one block is ~_TARGET_BLOCK_BYTES; the grid uses cdiv so
            rows need NOT divide tile_r.
    Returns None if no 128-aligned flattening exists (caller falls back to a
    metadata-only reshape, which is what the op really is anyway).
    """
    pack = max(8, 32 // max(int(itemsize), 1))  # dtype-aware sublane packing
    for lanes in (1024, 512, 256, 128):
        if total_elems % lanes:
            continue
        rows = total_elems // lanes
        # Small array: a single full-extent block (legal regardless of rows % pack).
        if rows * lanes * itemsize <= _TARGET_BLOCK_BYTES:
            return rows, lanes, rows
        tile_r = (_TARGET_BLOCK_BYTES // (lanes * itemsize)) // pack * pack
        tile_r = max(pack, min(tile_r, rows))
        return rows, lanes, tile_r
    return None


def _pallas_copy_2d(x2d, tile_r):
    """Materialized identity copy of a lane-dense (rows, lanes) slab."""
    rows, lanes = x2d.shape
    grid = (pl.cdiv(rows, tile_r),)  # ragged last block handled by Pallas masking

    return pl.pallas_call(
        _copy_kernel,
        out_shape=jax.ShapeDtypeStruct((rows, lanes), x2d.dtype),
        grid_spec=pltpu.PrefetchScalarGridSpec(
            num_scalar_prefetch=0,
            grid=grid,
            in_specs=[pl.BlockSpec((tile_r, lanes), lambda i: (i, 0))],
            out_specs=pl.BlockSpec((tile_r, lanes), lambda i: (i, 0)),
        ),
        compiler_params=pltpu.CompilerParams(
            dimension_semantics=("parallel",),  # shards across TCs on v7x
            vmem_limit_bytes=_VMEM_LIMIT_BYTES,
        ),
    )(x2d)


class View:
    """JAX/Pallas equivalent of the PyTorch View module."""

    def __init__(self, shape):
        self.shape = tuple(shape)

    def _out_shape(self, x):
        total = math.prod(x.shape)
        feat = math.prod(self.shape)
        assert total % feat == 0, "incompatible view shape"
        return (total // feat, *self.shape)

    def __call__(self, x):
        # Fast path (and the semantically exact one): a view/reshape of a
        # contiguous array is pure metadata — no data movement, no kernel.
        return jnp.reshape(x, self._out_shape(x))

    def materialized(self, x):
        # Optional: reshape AND materialize a fresh HBM buffer via a
        # lane-dense Pallas copy (no input/output aliasing).
        out_shape = self._out_shape(x)
        total = math.prod(x.shape)
        layout = _choose_layout(total, jnp.dtype(x.dtype).itemsize)
        if layout is None:
            # No 128-aligned flattening: fall back to the metadata reshape.
            return jnp.reshape(x, out_shape)
        rows, lanes, tile_r = layout
        x2d = jnp.reshape(x, (rows, lanes))  # row-major flatten (== torch .view)
        y2d = _pallas_copy_2d(x2d, tile_r)
        return jnp.reshape(y2d, out_shape)


if __name__ == "__main__":
    key = jax.random.PRNGKey(0)

    # Small NCHW-ish input: batch=2, channels=4, spatial=16x16.
    x = jax.random.normal(key, (2, 4, 16, 16), dtype=jnp.float32)
    view = View((4, 256))  # (4, 16, 16) -> (4, 256) after the batch dim
    ref = jnp.reshape(x, (-1, 4, 256))

    # Default path: metadata-only reshape (primary recommendation).
    out = jax.block_until_ready(view(x))
    assert out.shape == (2, 4, 256), out.shape
    assert out.dtype == x.dtype
    assert bool(jnp.array_equal(out, ref))

    # Pallas copy path (single full-extent block at this size).
    out_mat = jax.block_until_ready(view.materialized(x))
    assert out_mat.shape == (2, 4, 256)
    assert bool(jnp.array_equal(out_mat, ref))

    # Larger case exercising the multi-block cdiv path with a ragged last
    # block: 1536 rows x 1024 lanes f32 -> tile_r=1024, grid=(2,).
    k2 = jax.random.PRNGKey(1)
    x2 = jax.random.normal(k2, (24, 64, 32, 32), dtype=jnp.float32)
    view2 = View((64 * 32 * 32,))
    ref2 = jnp.reshape(x2, (-1, 64 * 32 * 32))
    out2 = jax.block_until_ready(view2(x2))
    out2_mat = jax.block_until_ready(view2.materialized(x2))
    assert out2.shape == ref2.shape and out2_mat.shape == ref2.shape
    assert bool(jnp.array_equal(out2, ref2))
    assert bool(jnp.array_equal(out2_mat, ref2))

    # bf16 case (dtype-aware sublane pack = 16 in the layout search).
    x3 = jax.random.normal(key, (2, 4, 16, 16), dtype=jnp.bfloat16)
    out3 = jax.block_until_ready(View((4, 256)).materialized(x3))
    assert bool(jnp.array_equal(out3, jnp.reshape(x3, (-1, 4, 256))))

    print("KERNEL_OK")
</pallas_src>

<mosaic_0001>
module attributes {stable_mosaic.version = 11 : i64} {
  func.func @_copy_kernel(%arg0: i32, %arg1: memref<2x1024xf32, #tpu.memory_space<vmem>>, %arg2: memref<2x1024xf32, #tpu.memory_space<vmem>>) attributes {dimension_semantics = [#tpu.dimension_semantics<parallel>], iteration_bounds = array<i64: 1>, scalar_prefetch = 0 : i64, scratch_operands = 0 : i64, tpu.core_type = #tpu.core_type<tc>, window_params = [{transform_indices = @transform_0, window_bounds = array<i64: 2, 1024>}, {transform_indices = @transform_1, window_bounds = array<i64: 2, 1024>}]} {
    %c0 = arith.constant 0 : index
    %c0_0 = arith.constant 0 : index
    %0 = vector.load %arg1[%c0, %c0_0] : memref<2x1024xf32, #tpu.memory_space<vmem>>, vector<2x1024xf32>
    %c0_1 = arith.constant 0 : index
    %c0_2 = arith.constant 0 : index
    %1 = vector.load %arg2[%c0_1, %c0_2] : memref<2x1024xf32, #tpu.memory_space<vmem>>, vector<2x1024xf32>
    tpu.vector_store %arg2[%c0_1, %c0_2], %0 {strides = array<i32>} : memref<2x1024xf32, #tpu.memory_space<vmem>>, vector<2x1024xf32>,
    return
  }
  func.func @transform_0(%arg0: i32) -> (i32, i32) {
    %c0_i32 = arith.constant 0 : i32
    %c0_i32_0 = arith.constant 0 : i32
    return %arg0, %c0_i32 : i32, i32
  }
  func.func @transform_1(%arg0: i32) -> (i32, i32) {
    %c0_i32 = arith.constant 0 : i32
    %c0_i32_0 = arith.constant 0 : i32
    return %arg0, %c0_i32 : i32, i32
  }
}

</mosaic_0001>

<bundles_post_ra>
// kernel: tpu_custom_call.1
= control target key start
LH: loop header
LB: loop body
LE: loop exit
PB: predicated region body
PF: predicated region fallthrough
CT: control target
= control target key end

     0   :  { %6 = vsyncpa [#allocation3], 0  ;;  %s104_s0 = inlined_call_operand.hbm [shape: f32[2,1024], index: 0, kind: input, shape index: {}]   ;;  %s105_s1 = inlined_call_operand.hbm [shape: f32[2,1024], index: 1, kind: output, shape index: {}]  }
   0x1   :  { %7 = vsyncpa [#allocation4], 0  ;;  %s86_s6 = smov [#allocation2]  }
   0x2   :  { %s14_s7 = sshll.u32 %s86_s6, 4  ;;  %s15_s7 = int_to_ptr.vmem [resolvable:$true] %s14_s7 }
   0x3   :  { %s50_s8 = scalar_lea.vmem %s15_s7, 256  ;;  %p55_p1 = scmp.lt.s32.totalorder %s15_s7, %s15_s7 }
   0x4   :  { %p51_p0 = scmp.ne.s32.totalorder %s15_s7, %s50_s8  ;;  %p56_p2 = scmp.lt.s32.totalorder %s50_s8, %s50_s8 }
   0x6   :  { %p57_p3 = por %p56_p2, %p55_p1 }
   0x8   :  { %p58_p4 = pnand %p57_p3, %p51_p0 }
   0xa   :  { %61 = shalt.err (!%p58_p4)
}
   0xb   :  { %17 = dma.hbm_to_vmem [thread:$0]  %s104_s0, 256, %s15_s7, [#allocation3]  }
   0xc   :  { %82 = dma.done.wait [#allocation3], 256  }
   0xd   :  { %83 = vsyncadd [#allocation3], 4294967040  ;;  %s87_s11 = smov [#allocation5]   ;;  %v21_v0 = vld [vmem:[#allocation2] sm:$0xff]  ;;  %v22_v1 = vld [vmem:[#allocation2 + $0x8] sm:$0xff] }
   0xe   :  { %s31_s12 = sshll.u32 %s87_s11, 4  ;;  %23 = vst [vmem:[#allocation5] sm:$0xff] %v21_v0  ;;  %24 = vst [vmem:[#allocation5 + $0x8] sm:$0xff] %v22_v1  ;;  %s32_s12 = int_to_ptr.vmem [resolvable:$true] %s31_s12 }
   0xf   :  { %s62_s13 = scalar_lea.vmem %s32_s12, 256  ;;  %p67_p6 = scmp.lt.s32.totalorder %s32_s12, %s32_s12 }
  0x10   :  { %p63_p5 = scmp.ne.s32.totalorder %s32_s12, %s62_s13  ;;  %p68_p7 = scmp.lt.s32.totalorder %s62_s13, %s62_s13 }
  0x12   :  { %p69_p8 = por %p68_p7, %p67_p6 }
  0x14   :  { %p70_p9 = pnand %p69_p8, %p63_p5 }
  0x16   :  { %73 = shalt.err (!%p70_p9)
}
  0x17   :  { %34 = dma.vmem_to_hbm [thread:$0]  %s32_s12, 256, %s105_s1, [#allocation4]  }
  0x18   :  { %84 = dma.done.wait [#allocation4], 256  }
  0x19   :  { %85 = vsyncadd [#allocation4], 4294967040 }
  0x1a   :  { %38 = vsyncpa [#allocation3], 1 }
  0x1b   :  { %39 = vsyncpa [#allocation4], 1 }

</bundles_post_ra>
